<compile_context>
chip_gen: v7x
topology: tpu7x:2x2x1
jax: 0.10.0
libtpu: 0.0.40
codegen_flags: <defaults>
</compile_context>

<pallas_src>
import functools

import jax
import jax.numpy as jnp
from jax.experimental import pallas as pl
from jax.experimental.pallas import tpu as pltpu


def _ce_loss_kernel(pred_ref, label_ref, out_ref, *, n_total, tn, tiles_per_split):
    s = pl.program_id(0)          # batch split (megacore-parallel axis)
    i = pl.program_id(1)          # tile within the split (reduction axis)

    @pl.when(i == 0)
    def _init():
        out_ref[...] = jnp.zeros_like(out_ref)

    pred = pred_ref[...].astype(jnp.float32)        # [TN, C] f32 for numerics
    lab = label_ref[...]                            # [TN, C] native dtype
    c = pred.shape[1]

    col = jax.lax.broadcasted_iota(jnp.int32, pred.shape, 1)        # [TN, C]

    # argmax(label, axis=1) with first-index tie-break (matches torch.max).
    lab_max = jnp.max(lab, axis=1, keepdims=True)                   # [TN, 1]
    idx = jnp.min(jnp.where(lab == lab_max, col, c), axis=1,
                  keepdims=True)                                    # [TN, 1]

    # Stable CE without a log_softmax / z temporary:
    #   loss_i = logsumexp(pred_i) - pred_i[idx_i]
    m = jnp.max(pred, axis=1, keepdims=True)                        # [TN, 1]
    sum_exp = jnp.sum(jnp.exp(pred - m), axis=1, keepdims=True)     # [TN, 1]
    lse = m + jnp.log(sum_exp)                                      # [TN, 1]
    picked = jnp.sum(jnp.where(col == idx, pred, 0.0), axis=1,
                     keepdims=True)                                 # [TN, 1]
    row_loss = lse - picked                                         # [TN, 1]

    # Mask rows past the batch end (partial tail block and clamped duplicate
    # tiles from the split-axis padding).
    g = s * tiles_per_split + i
    row = g * tn + jax.lax.broadcasted_iota(jnp.int32, (tn, 1), 0)
    row_loss = jnp.where(row < n_total, row_loss, 0.0)

    out_ref[...] += jnp.sum(row_loss, axis=0, keepdims=True)        # (1, 1)


def _pick_batch_tile(n, c, pred_itemsize, label_itemsize, budget_bytes):
    """Largest row tile whose total VMEM footprint fits the budget.

    Footprint = 2x double-buffered (pred + label) input blocks plus ~4 f32
    [TN, C]-sized in-kernel temporaries (f32 cast, exp result, iota, selects).
    """
    per_row = 2 * c * (pred_itemsize + label_itemsize) + 4 * c * 4
    tn = max(1, budget_bytes // per_row)
    if tn >= n:
        return n                              # whole array: full-dim block is legal
    if tn >= 32:
        tn = (tn // 32) * 32                  # dtype-safe sublane multiple
    else:
        tn = max(8, (tn // 8) * 8)
    return tn


def ce_loss(prediction: jax.Array, label: jax.Array, *, block_rows=None) -> jax.Array:
    """Pallas CELoss forward. prediction/label: [N, C]. Returns scalar f32."""
    assert prediction.ndim == 2 and prediction.shape == label.shape
    n, c = prediction.shape

    # Generation-aware VMEM budgeting (v5e/v6e: 128 MiB, v7x: 64 MiB per TC).
    try:
        vmem_cap = int(pltpu.get_tpu_info().vmem_capacity_bytes)
    except Exception:
        vmem_cap = 64 * 1024 * 1024           # conservative (v7x per-core)
    budget = min(int(0.5 * vmem_cap), 40 * 1024 * 1024)
    vmem_limit = min(int(0.75 * vmem_cap), vmem_cap - (2 << 20))

    if block_rows is None:
        tn = _pick_batch_tile(n, c, prediction.dtype.itemsize,
                              label.dtype.itemsize, budget)
    else:
        tn = min(int(block_rows), n)
    num_tiles = pl.cdiv(n, tn)

    # Two batch splits -> megacore-parallel leading axis (up to ~2x on v7x);
    # on single-core chips it costs at most one extra (fully masked) step.
    nsplits = 2 if num_tiles >= 2 else 1
    tiles_per_split = pl.cdiv(num_tiles, nsplits)
    last_block = num_tiles - 1

    def in_map(s_, i_):
        # Clamp so padded (s, i) combos re-read the last valid block; their
        # contribution is zeroed by the in-kernel row mask.
        return (jnp.minimum(s_ * tiles_per_split + i_, last_block), 0)

    kernel = functools.partial(_ce_loss_kernel, n_total=n, tn=tn,
                               tiles_per_split=tiles_per_split)
    partial_sums = pl.pallas_call(
        kernel,
        out_shape=jax.ShapeDtypeStruct((nsplits, 1), jnp.float32),
        grid_spec=pltpu.PrefetchScalarGridSpec(
            num_scalar_prefetch=0,
            grid=(nsplits, tiles_per_split),
            in_specs=[
                pl.BlockSpec((tn, c), in_map),   # prediction tile
                pl.BlockSpec((tn, c), in_map),   # label tile (native dtype)
            ],
            out_specs=pl.BlockSpec((1, 1), lambda s_, i_: (s_, 0)),
        ),
        compiler_params=pltpu.CompilerParams(
            dimension_semantics=("parallel", "arbitrary"),
            vmem_limit_bytes=vmem_limit,
        ),
    )(prediction, label)

    return jnp.sum(partial_sums) * jnp.float32(1.0 / n)


def _ce_loss_ref(prediction, label):
    """Pure-JAX reference for validation."""
    idx = jnp.argmax(label, axis=1)
    log_sm = jax.nn.log_softmax(prediction.astype(jnp.float32), axis=1)
    return -jnp.mean(jnp.take_along_axis(log_sm, idx[:, None], axis=1))


if __name__ == "__main__":
    key = jax.random.PRNGKey(0)

    # Small shapes consistent with the forward pass: batch N=8, classes C=32.
    k1, k2, k3, k4 = jax.random.split(key, 4)
    N, C = 8, 32
    prediction = jax.random.normal(k1, (N, C), dtype=jnp.float32)
    label = jax.random.uniform(k2, (N, C), dtype=jnp.float32)

    loss = jax.block_until_ready(ce_loss(prediction, label))
    ref = jax.block_until_ready(_ce_loss_ref(prediction, label))
    assert jnp.allclose(loss, ref, atol=1e-5, rtol=1e-5), (loss, ref)

    # Exercise the multi-tile / split / tail-mask path with a forced small tile.
    N2, C2 = 300, 128
    prediction2 = jax.random.normal(k3, (N2, C2), dtype=jnp.float32)
    label2 = jax.random.uniform(k4, (N2, C2), dtype=jnp.float32)

    loss2 = jax.block_until_ready(ce_loss(prediction2, label2, block_rows=64))
    ref2 = jax.block_until_ready(_ce_loss_ref(prediction2, label2))
    assert jnp.allclose(loss2, ref2, atol=1e-5, rtol=1e-5), (loss2, ref2)

    print("KERNEL_OK")
</pallas_src>

<mosaic_0001>
module attributes {stable_mosaic.version = 11 : i64} {
  func.func @_ce_loss_kernel(%arg0: i32, %arg1: i32, %arg2: memref<8x32xf32, #tpu.memory_space<vmem>>, %arg3: memref<8x32xf32, #tpu.memory_space<vmem>>, %arg4: memref<1x1xf32, #tpu.memory_space<vmem>>) attributes {dimension_semantics = [#tpu.dimension_semantics<parallel>, #tpu.dimension_semantics<arbitrary>], iteration_bounds = array<i64: 1, 1>, scalar_prefetch = 0 : i64, scratch_operands = 0 : i64, tpu.core_type = #tpu.core_type<tc>, window_params = [{transform_indices = @transform_0, window_bounds = array<i64: 8, 32>}, {transform_indices = @transform_1, window_bounds = array<i64: 8, 32>}, {transform_indices = @transform_2, window_bounds = array<i64: 1, 1>}]} {
    %c0_i32 = arith.constant 0 : i32
    %0 = arith.cmpi eq, %arg1, %c0_i32 : i32
    %1 = arith.extui %0 : i1 to i32
    %c0_i32_0 = arith.constant 0 : i32
    %2 = arith.cmpi ne, %1, %c0_i32_0 : i32
    scf.if %2 {
      %cst_16 = arith.constant 0.000000e+00 : f32
      %45 = vector.broadcast %cst_16 : f32 to vector<1x1xf32>
      %c0_17 = arith.constant 0 : index
      %c0_18 = arith.constant 0 : index
      %46 = vector.load %arg4[%c0_17, %c0_18] : memref<1x1xf32, #tpu.memory_space<vmem>>, vector<1x1xf32>
      tpu.vector_store %arg4[%c0_17, %c0_18], %45 {strides = array<i32>} : memref<1x1xf32, #tpu.memory_space<vmem>>, vector<1x1xf32>,
    } else {
    }
    %c0 = arith.constant 0 : index
    %c0_1 = arith.constant 0 : index
    %3 = vector.load %arg2[%c0, %c0_1] : memref<8x32xf32, #tpu.memory_space<vmem>>, vector<8x32xf32>
    %c0_2 = arith.constant 0 : index
    %c0_3 = arith.constant 0 : index
    %4 = vector.load %arg3[%c0_2, %c0_3] : memref<8x32xf32, #tpu.memory_space<vmem>>, vector<8x32xf32>
    %5 = tpu.iota {dimensions = array<i32: 1>} : vector<8x32xi32>
    %cst = arith.constant dense<0xFF800000> : vector<8xf32>
    %6 = vector.multi_reduction <maximumf>, %4, %cst [1] : vector<8x32xf32> to vector<8xf32>
    %7 = vector.shape_cast %6 : vector<8xf32> to vector<8x1xf32>
    %8 = vector.broadcast %7 : vector<8x1xf32> to vector<8x32xf32>
    %9 = arith.cmpf oeq, %4, %8 : vector<8x32xf32>
    %c32_i32 = arith.constant 32 : i32
    %10 = vector.broadcast %c32_i32 : i32 to vector<8x32xi32>
    %11 = arith.select %9, %5, %10 : vector<8x32xi1>, vector<8x32xi32>
    %cst_4 = arith.constant dense<2147483647> : vector<8xi32>
    %12 = vector.multi_reduction <minsi>, %11, %cst_4 [1] : vector<8x32xi32> to vector<8xi32>
    %13 = vector.shape_cast %12 : vector<8xi32> to vector<8x1xi32>
    %cst_5 = arith.constant dense<0xFF800000> : vector<8xf32>
    %14 = vector.multi_reduction <maximumf>, %3, %cst_5 [1] : vector<8x32xf32> to vector<8xf32>
    %15 = vector.shape_cast %14 : vector<8xf32> to vector<8x1xf32>
    %16 = vector.broadcast %15 : vector<8x1xf32> to vector<8x32xf32>
    %17 = arith.subf %3, %16 : vector<8x32xf32>
    %18 = math.exp %17 : vector<8x32xf32>
    %cst_6 = arith.constant dense<0.000000e+00> : vector<8xf32>
    %19 = vector.multi_reduction <add>, %18, %cst_6 [1] : vector<8x32xf32> to vector<8xf32>
    %20 = vector.shape_cast %19 : vector<8xf32> to vector<8x1xf32>
    %21 = math.log %20 : vector<8x1xf32>
    %22 = arith.addf %15, %21 : vector<8x1xf32>
    %23 = vector.broadcast %13 : vector<8x1xi32> to vector<8x32xi32>
    %24 = arith.cmpi eq, %5, %23 : vector<8x32xi32>
    %cst_7 = arith.constant 0.000000e+00 : f32
    %25 = vector.broadcast %cst_7 : f32 to vector<8x32xf32>
    %26 = arith.select %24, %3, %25 : vector<8x32xi1>, vector<8x32xf32>
    %cst_8 = arith.constant dense<0.000000e+00> : vector<8xf32>
    %27 = vector.multi_reduction <add>, %26, %cst_8 [1] : vector<8x32xf32> to vector<8xf32>
    %28 = vector.shape_cast %27 : vector<8xf32> to vector<8x1xf32>
    %29 = arith.subf %22, %28 : vector<8x1xf32>
    %c1_i32 = arith.constant 1 : i32
    %30 = arith.muli %arg0, %c1_i32 : i32
    %31 = arith.addi %30, %arg1 : i32
    %c8_i32 = arith.constant 8 : i32
    %32 = arith.muli %31, %c8_i32 : i32
    %33 = tpu.iota {dimensions = array<i32: 0>} : vector<8x1xi32>
    %34 = vector.broadcast %32 : i32 to vector<8x1xi32>
    %35 = arith.addi %34, %33 : vector<8x1xi32>
    %c8_i32_9 = arith.constant 8 : i32
    %36 = vector.broadcast %c8_i32_9 : i32 to vector<8x1xi32>
    %37 = arith.cmpi slt, %35, %36 : vector<8x1xi32>
    %cst_10 = arith.constant 0.000000e+00 : f32
    %38 = vector.broadcast %cst_10 : f32 to vector<8x1xf32>
    %39 = arith.select %37, %29, %38 : vector<8x1xi1>, vector<8x1xf32>
    %c0_11 = arith.constant 0 : index
    %c0_12 = arith.constant 0 : index
    %40 = vector.load %arg4[%c0_11, %c0_12] : memref<1x1xf32, #tpu.memory_space<vmem>>, vector<1x1xf32>
    %cst_13 = arith.constant dense<0.000000e+00> : vector<1xf32>
    %41 = vector.multi_reduction <add>, %39, %cst_13 [0] : vector<8x1xf32> to vector<1xf32>
    %42 = vector.shape_cast %41 : vector<1xf32> to vector<1x1xf32>
    %43 = arith.addf %40, %42 : vector<1x1xf32>
    %c0_14 = arith.constant 0 : index
    %c0_15 = arith.constant 0 : index
    %44 = vector.load %arg4[%c0_14, %c0_15] : memref<1x1xf32, #tpu.memory_space<vmem>>, vector<1x1xf32>
    tpu.vector_store %arg4[%c0_14, %c0_15], %43 {strides = array<i32>} : memref<1x1xf32, #tpu.memory_space<vmem>>, vector<1x1xf32>,
    return
  }
  func.func @transform_0(%arg0: i32, %arg1: i32) -> (i32, i32) {
    %c1_i32 = arith.constant 1 : i32
    %0 = arith.muli %arg0, %c1_i32 : i32
    %1 = arith.addi %0, %arg1 : i32
    %c0_i32 = arith.constant 0 : i32
    %2 = arith.minsi %1, %c0_i32 : i32
    %c0_i32_0 = arith.constant 0 : i32
    %c0_i32_1 = arith.constant 0 : i32
    return %2, %c0_i32_0 : i32, i32
  }
  func.func @transform_1(%arg0: i32, %arg1: i32) -> (i32, i32) {
    %c1_i32 = arith.constant 1 : i32
    %0 = arith.muli %arg0, %c1_i32 : i32
    %1 = arith.addi %0, %arg1 : i32
    %c0_i32 = arith.constant 0 : i32
    %2 = arith.minsi %1, %c0_i32 : i32
    %c0_i32_0 = arith.constant 0 : i32
    %c0_i32_1 = arith.constant 0 : i32
    return %2, %c0_i32_0 : i32, i32
  }
  func.func @transform_2(%arg0: i32, %arg1: i32) -> (i32, i32) {
    %c0_i32 = arith.constant 0 : i32
    %c0_i32_0 = arith.constant 0 : i32
    return %arg0, %c0_i32 : i32, i32
  }
}

</mosaic_0001>

<bundles_post_ra>
// kernel: tpu_custom_call.1
= control target key start
LH: loop header
LB: loop body
LE: loop exit
PB: predicated region body
PF: predicated region fallthrough
CT: control target
= control target key end

     0   :  { %7 = vsyncpa [#allocation3], 0  ;;  %s281_s0 = inlined_call_operand.hbm [shape: f32[8,32], index: 0, kind: input, shape index: {}]   ;;  %s282_s1 = inlined_call_operand.hbm [shape: f32[8,32], index: 1, kind: input, shape index: {}]   ;;  %s283_s2 = inlined_call_operand.hbm [shape: f32[1,1], index: 2, kind: output, shape index: {}]  }
   0x1   :  { %8 = vsyncpa [#allocation6], 0 }
   0x2   :  { %9 = vsyncpa [#allocation4], 0  ;;  %s219_s9 = smov [#allocation2]   ;;  %s220_s11 = smov [#allocation5]  }
   0x3   :  { %s21_s10 = sshll.u32 %s219_s9, 4  ;;  %s36_s12 = sshll.u32 %s220_s11, 4  ;;  %s22_s10 = int_to_ptr.vmem [resolvable:$true] %s21_s10  ;;  %s37_s12 = int_to_ptr.vmem [resolvable:$true] %s36_s12 }
   0x4   :  { %s147_s15 = scalar_lea.hbm %s281_s0, 128 }
   0x5   :  { %p148_p0 = scmp.ne.s32.totalorder %s281_s0, %s147_s15  ;;  %p151_p1 = scmp.lt.u32.totalorder %s147_s15, %s281_s0 }
   0x7   :  { %p153_p2 = pnand %p151_p1, %p148_p0 }
   0x9   :  { %156 = shalt.err (!%p153_p2)
}
   0xa   :  { %s157_s20 = scalar_lea.vmem %s22_s10, 128  ;;  %p162_p4 = scmp.lt.s32.totalorder %s22_s10, %s22_s10 }
   0xb   :  { %p158_p3 = scmp.ne.s32.totalorder %s22_s10, %s157_s20  ;;  %p163_p5 = scmp.lt.s32.totalorder %s157_s20, %s157_s20 }
   0xd   :  { %p164_p6 = por %p163_p5, %p162_p4 }
   0xf   :  { %p165_p7 = pnand %p164_p6, %p158_p3 }
  0x11   :  { %168 = shalt.err (!%p165_p7)
}
  0x12   :  { %24 = dma.hbm_to_vmem [thread:$0]  %s281_s0, 128, %s22_s10, [#allocation3]  }
  0x13   :  { %s169_s25 = scalar_lea.hbm %s282_s1, 128 }
  0x14   :  { %p170_p8 = scmp.ne.s32.totalorder %s282_s1, %s169_s25  ;;  %p173_p9 = scmp.lt.u32.totalorder %s169_s25, %s282_s1 }
  0x16   :  { %p175_p10 = pnand %p173_p9, %p170_p8 }
  0x18   :  { %178 = shalt.err (!%p175_p10)
}
  0x19   :  { %s179_s30 = scalar_lea.vmem %s37_s12, 128  ;;  %p184_p12 = scmp.lt.s32.totalorder %s37_s12, %s37_s12 }
  0x1a   :  { %p180_p11 = scmp.ne.s32.totalorder %s37_s12, %s179_s30  ;;  %p185_p13 = scmp.lt.s32.totalorder %s179_s30, %s179_s30 }
  0x1c   :  { %p186_p0 = por %p185_p13, %p184_p12 }
  0x1e   :  { %p187_p1 = pnand %p186_p0, %p180_p11 }
  0x20   :  { %190 = shalt.err (!%p187_p1)
}
  0x21   :  { %39 = dma.hbm_to_vmem [thread:$0]  %s282_s1, 128, %s37_s12, [#allocation6]  }
  0x22   :  { %213 = dma.done.wait [#allocation3], 128  }
  0x23   :  { %214 = vsyncadd [#allocation3], 4294967168 }
  0x24   :  { %215 = dma.done.wait [#allocation6], 128  }
  0x25   :  { %216 = vsyncadd [#allocation6], 4294967168  ;;  %vm62_vm0 = vcmask 261120   ;;  %v59_v0 = vld [vmem:[#allocation5] sm:$0xff]  ;;  %v58_v1 = vld [vmem:[#allocation2] sm:$0xff]  ;;  %v60_v4 = vlaneseq  ;;  %vm56_vm4 = vcmask 0  }
  0x26   :  { %v63_v2 = vsel %vm62_vm0, %v59_v0, -inf  ;;  %v83_v3 = vsel %vm62_vm0, %v58_v1, -inf  ;;  %v221_v27 = vmov 0.0   ;;  %s222_s1 = smov [#allocation7]  }
  0x27   :  { %64 = vmax.xlane.f32.xlu0 %v63_v2  ;;  %84 = vmax.xlane.f32.xlu1 %v83_v3  ;;  %v61_v5 = vand.u32 127, %v60_v4  ;;  %57 = vst.msk [vmem:[#allocation7] sm:$0x1] %vm56_vm4, %v221_v27  ;;  %s125_s4 = sshll.u32 %s222_s1, 4  ;;  %s126_s4 = int_to_ptr.vmem [resolvable:$true] %s125_s4 }
  0x28   :  { %s191_s5 = scalar_lea.vmem %s126_s4, 16  ;;  %s195_s6 = scalar_lea.vmem %s126_s4, 32 }
  0x29   :  { %p192_p2 = scmp.ne.s32.totalorder %s126_s4, %s191_s5  ;;  %p196_p3 = scmp.lt.s32.totalorder %s126_s4, %s126_s4 }
  0x2a   :  { %p197_p4 = scmp.lt.s32.totalorder %s195_s6, %s191_s5 }
  0x2c   :  { %p198_p5 = por %p197_p4, %p196_p3 }
  0x2e   :  { %v109_v39 = vld [vmem:[#allocation7] sm:$0x1]  ;;  %p199_p6 = pnand %p198_p5, %p192_p2 }
  0xb4   :  { %v65_v6 = vpop.xlane.xlu0 %64  ;;  %v85_v7 = vpop.xlane.xlu1 %84 }
  0xb5   :  { %vm66_vm1 = vcmp.eq.f32.partialorder %v59_v0, %v65_v6  ;;  %v86_v8 = vsub.f32 %v58_v1, %v85_v7 }
  0xb6   :  { %v67_v9 = vsel %vm66_vm1, %v61_v5, 32 }
  0xb7   :  { %v68_v10 = vsel %vm62_vm0, %v67_v9, 2147483647  ;;  %v87_v11 = vmul.f32 1.442695, %v86_v8 }
  0xb8   :  { %v70_v12 = vshra.s32 %v68_v10, 16  ;;  %v69_v16 = vand.u32 65535, %v68_v10 }
  0xb9   :  { %143 = vpow2.f32 %v87_v11 }
  0xba   :  { %v72_v13 = vcvt.s32.f32 %v70_v12  ;;  %v71_v18 = vcvt.s32.f32 %v69_v16 }
  0xbc   :  { %73 = vmin.xlane.f32.xlu0 %v72_v13 }
  0xc3   :  { %v144_v14 = vpop.eup %143 }
  0xc4   :  { %v89_v15 = vsel %vm62_vm0, %v144_v14, 0.0 }
  0xc5   :  { %90 = vadd.xlane.f32.xlu0 %v89_v15 }
 0x149   :  { %v74_v17 = vpop.xlane.xlu0 %73 }
 0x14a   :  { %vm75_vm2 = vcmp.eq.f32.partialorder %v72_v13, %v74_v17  ;;  %v80_v20 = vcvt.f32.s32 %v74_v17 }
 0x14b   :  { %v76_v19 = vsel %vm75_vm2, %v71_v18, inf }
 0x14c   :  { %77 = vmin.xlane.f32.xlu1 %v76_v19  ;;  %v81_v22 = vshll.u32 %v80_v20, 16 }
 0x152   :  { %v91_v28 = vpop.xlane.xlu0 %90 }
 0x153   :  { %145 = vlog2.f32 %v91_v28 }
 0x15d   :  { %v146_v29 = vpop.eup %145 }
 0x15e   :  { %v93_v30 = vmul.f32 0.6931472, %v146_v29 }
 0x160   :  { %v94_v31 = vadd.f32 %v93_v30, %v85_v7 }
 0x1d9   :  { %v78_v21 = vpop.xlane.xlu1 %77 }
 0x1da   :  { %v79_v23 = vcvt.f32.s32 %v78_v21 }
 0x1dc   :  { %v82_v24 = vadd.s32 %v81_v22, %v79_v23 }
 0x1de   :  { %vm95_vm3 = vcmp.eq.s32.totalorder %v61_v5, %v82_v24 }
 0x1df   :  { %v96_v25 = vsel %vm95_vm3, %v58_v1, 0.0 }
 0x1e0   :  { %v97_v26 = vsel %vm62_vm0, %v96_v25, 0.0 }
 0x1e1   :  { %98 = vadd.xlane.f32.xlu1 %v97_v26 }
 0x26e   :  { %v99_v32 = vpop.xlane.xlu1 %98 }
 0x26f   :  { %v100_v33 = vsub.f32 %v94_v31, %v99_v32 }
 0x271   :  { %v110_v34 = vrot.slane %v100_v33, 4 }
 0x273   :  { %v111_v35 = vadd.f32 %v110_v34, %v100_v33 }
 0x275   :  { %v112_v36 = vrot.slane %v111_v35, 2 }
 0x277   :  { %v113_v37 = vadd.f32 %v112_v36, %v111_v35 }
 0x279   :  { %v114_v38 = vrot.slane %v113_v37, 1 }
 0x27b   :  { %v115_v40 = vadd.f32 %v114_v38, %v113_v37 }
 0x27d   :  { %v116_v41 = vadd.f32 %v115_v40, %v109_v39 }
 0x27f   :  { %118 = vst.msk [vmem:[#allocation7] sm:$0x1] %vm56_vm4, %v116_v41 }
 0x280   :  { %202 = shalt.err (!%p199_p6)
}
 0x281   :  { %s203_s9 = scalar_lea.hbm %s283_s2, 16 }
 0x282   :  { %p204_p7 = scmp.ne.s32.totalorder %s283_s2, %s203_s9  ;;  %p207_p8 = scmp.lt.u32.totalorder %s203_s9, %s283_s2 }
 0x284   :  { %p209_p9 = pnand %p207_p8, %p204_p7 }
 0x286   :  { %212 = shalt.err (!%p209_p9)
}
 0x287   :  { %128 = dma.vmem_to_hbm [thread:$0]  %s126_s4, 16, %s283_s2, [#allocation4]  }
 0x288   :  { %217 = dma.done.wait [#allocation4], 16  }
 0x289   :  { %218 = vsyncadd [#allocation4], 4294967280 }
 0x28a   :  { %132 = vsyncpa [#allocation3], 1 }
 0x28b   :  { %133 = vsyncpa [#allocation6], 1 }
 0x28c   :  { %134 = vsyncpa [#allocation4], 1 }

</bundles_post_ra>
